<compile_context>
chip_gen: v5e
topology: v5e:2x2
jax: 0.10.0
libtpu: 0.0.40
codegen_flags: <defaults>
</compile_context>

<pallas_src>
import functools

import jax
import jax.numpy as jnp
from jax.experimental import pallas as pl
from jax.experimental.pallas import tpu as pltpu


def _round_up(x, m):
    return ((x + m - 1) // m) * m


def _pick_tb(batch, seq_len, h_bytes, tb_cap=512, buf_budget=24 * 1024 * 1024):
    """Pairs per grid step: the largest TB (capped) whose double-buffered blocks
    fit `buf_budget` even under worst-case 128-lane VMEM padding of the small
    minor dims (safe for v7x's 64 MiB/TC as well as v5e/v6e's 128 MiB)."""
    per_pair = 2 * 2 * seq_len * 128 * h_bytes   # gathered-h block (2 halves, x2 buffers)
    per_pair += 2 * 2 * seq_len * 128 * 4        # gathered-logit block (f32, (L,1) tiles)
    per_pair += 2 * 128 * 4                      # output row (f32, <=128 lanes)
    tb = max(8, min(tb_cap, buf_budget // per_pair))
    tb = min(tb, _round_up(batch, 8))            # don't over-pad tiny batches
    return _round_up(tb, 8)


def _matcher_kernel(match_mlp, h_ref, s_ref, wfc_ref, bfc_ref, out_ref):
    """One grid step = TB (q1, q2) pairs.

    h_ref   : (2, TB, L, 2H)  gathered tanh(emb @ W_h + b_h) rows (table dtype)
    s_ref   : (2, TB, L, 1)   gathered per-token attention logits (f32)
    wfc_ref : (4H, OW)        FC weight, zero-padded to OW output lanes
    bfc_ref : (1, OW)         FC bias, zero-padded
    out_ref : (TB, OW)        output slab; columns 0..1 valid
    """
    _, TB, L, H2 = h_ref.shape
    OW = out_ref.shape[-1]

    # Softmax over the token axis (EUP exp + approx reciprocal; XLU reduces).
    s = s_ref[...]
    s = s - jnp.max(s, axis=2, keepdims=True)
    e = jnp.exp(s)
    a = e * pl.reciprocal(jnp.sum(e, axis=2, keepdims=True), approx=True)   # (2,TB,L,1)

    # Attention pooling over L (VPU multiply + sublane reduce); f32 accumulate.
    h = h_ref[...].astype(jnp.float32)                                      # (2,TB,L,2H)
    pooled = jnp.sum(a * h, axis=2)                                         # (2,TB,2H)
    v1 = pooled[0]
    v2 = pooled[1]

    if match_mlp:
        # concat([v1, v2]) @ W_fc + b_fc as a split matmul (no lane concat).
        out = (jnp.dot(v1, wfc_ref[0:H2, :], preferred_element_type=jnp.float32)
               + jnp.dot(v2, wfc_ref[H2:2 * H2, :],
                         preferred_element_type=jnp.float32)
               + bfc_ref[...].astype(jnp.float32))                          # (TB, OW)
    else:
        num = jnp.sum(v1 * v2, axis=1, keepdims=True)                       # (TB, 1)
        n1 = jnp.sum(v1 * v1, axis=1, keepdims=True)
        n2 = jnp.sum(v2 * v2, axis=1, keepdims=True)
        cosv = num * jax.lax.rsqrt(n1 * n2 + 1e-12)
        lane = jax.lax.broadcasted_iota(jnp.int32, (TB, OW), 1)
        out = jnp.where(lane == 0, 1.0 - cosv,
                        jnp.where(lane == 1, cosv, 0.0))                    # (TB, OW)

    out_ref[...] = out.astype(out_ref.dtype)


def text_matcher_forward(q1_ids, q2_ids, params, match_module_type="mlp", tb_cap=512):
    """TextMatcher.forward: (B, L) int32 token ids x2 -> (B, 2) float32."""
    emb = params["embedding"]
    B, L = q1_ids.shape
    H2 = params["w_h"].shape[1]   # 2 * hidden_size
    H4 = params["w_fc"].shape[0]  # 4 * hidden_size
    OW = 8                        # padded output width (block last dim == full dim)

    # One-time per-vocab precompute (XLA): fold projection + attention logits
    # into gatherable tables.  Exact: tanh(emb[ids]@W_h+b_h)==tanh((emb@W_h)[ids]+b_h).
    h_table_f32 = jnp.tanh(emb.astype(jnp.float32) @ params["w_h"].astype(jnp.float32)
                           + params["b_h"].astype(jnp.float32))             # (V, 2H)
    h_table = h_table_f32.astype(emb.dtype)       # bf16 table halves gathered HBM bytes
    s_table = h_table.astype(jnp.float32) @ params["w_a"].astype(jnp.float32).T  # (V, 1)

    h_bytes = jnp.dtype(h_table.dtype).itemsize
    TB = _pick_tb(B, L, h_bytes, tb_cap=tb_cap)
    # Pad the batch to a multiple of 2*TB so the "parallel" grid axis splits
    # evenly across v7x's two TensorCores.  Padded rows use token id 0 and are
    # sliced off at the end.
    B_pad = _round_up(B, 2 * TB)

    ids = jnp.stack([q1_ids, q2_ids], axis=0).astype(jnp.int32)             # (2, B, L)
    if B_pad != B:
        ids = jnp.pad(ids, ((0, 0), (0, B_pad - B), (0, 0)))

    # Gather the precomputed tables (XLA glue, stays in table dtype / f32 logits).
    h_all = jnp.take(h_table, ids, axis=0)                                  # (2,B_pad,L,2H)
    s_all = jnp.take(s_table, ids, axis=0)                                  # (2,B_pad,L,1)

    wfc_pad = jnp.zeros((H4, OW), jnp.float32).at[:, :2].set(
        params["w_fc"].astype(jnp.float32))
    bfc_pad = jnp.zeros((1, OW), jnp.float32).at[:, :2].set(
        params["b_fc"].astype(jnp.float32))

    kernel = functools.partial(_matcher_kernel, match_module_type == "mlp")
    n_steps = B_pad // TB

    # Generation-aware VMEM limit (v7x has 64 MiB/TC vs 128 MiB on v5e/v6e).
    try:
        phys_vmem = int(pltpu.get_tpu_info().vmem_capacity_bytes)
    except Exception:
        phys_vmem = 64 * 1024 * 1024
    vmem_limit = min(48 * 1024 * 1024, (phys_vmem * 3) // 4)

    cost = pl.CostEstimate(
        flops=int(2 * B_pad * (4 * L * H2 + 2 * H2 * OW + 6 * L)),
        transcendentals=int(2 * B_pad * L),
        bytes_accessed=int(2 * B_pad * L * (H2 * h_bytes + 4) + B_pad * OW * 4),
    )

    out = pl.pallas_call(
        kernel,
        out_shape=jax.ShapeDtypeStruct((B_pad, OW), jnp.float32),
        grid_spec=pltpu.PrefetchScalarGridSpec(
            num_scalar_prefetch=0,
            grid=(n_steps,),
            in_specs=[
                pl.BlockSpec((2, TB, L, H2), lambda i: (0, i, 0, 0)),  # gathered h
                pl.BlockSpec((2, TB, L, 1), lambda i: (0, i, 0, 0)),   # gathered logits
                pl.BlockSpec((H4, OW), lambda i: (0, 0)),              # W_fc (VMEM-resident)
                pl.BlockSpec((1, OW), lambda i: (0, 0)),               # b_fc (VMEM-resident)
            ],
            out_specs=pl.BlockSpec((TB, OW), lambda i: (i, 0)),
        ),
        compiler_params=pltpu.CompilerParams(
            dimension_semantics=("parallel",),     # megacore / v7x 2-TC sharding
            vmem_limit_bytes=vmem_limit,
        ),
        cost_estimate=cost,
    )(h_all, s_all, wfc_pad, bfc_pad)

    return out[:B, :2]


def reference_forward(q1_ids, q2_ids, params, match_module_type):
    """Pure-JAX reference mirroring the module semantics (f32 compute)."""
    emb = params["embedding"].astype(jnp.float32)
    w_h = params["w_h"].astype(jnp.float32)
    b_h = params["b_h"].astype(jnp.float32)
    w_a = params["w_a"].astype(jnp.float32)

    def vec(ids):
        qe = jnp.take(emb, ids, axis=0)
        h = jnp.tanh(qe @ w_h + b_h)                    # (B, L, 2H)
        s = jnp.sum(h * w_a, axis=-1)                   # (B, L)
        a = jax.nn.softmax(s, axis=-1)
        return jnp.einsum("bl,blh->bh", a, h)           # (B, 2H)

    v1, v2 = vec(q1_ids), vec(q2_ids)
    if match_module_type == "mlp":
        return (jnp.concatenate([v1, v2], axis=1)
                @ params["w_fc"].astype(jnp.float32)
                + params["b_fc"].astype(jnp.float32))
    num = jnp.sum(v1 * v2, axis=1, keepdims=True)
    den = jnp.sqrt(jnp.sum(v1 * v1, axis=1, keepdims=True)
                   * jnp.sum(v2 * v2, axis=1, keepdims=True) + 1e-12)
    c = num / den
    return jnp.concatenate([1.0 - c, c], axis=1)


if __name__ == "__main__":
    # Small shapes consistent with the module: batch=2, seq=8, embed=32, hidden=16.
    B, L, E, H, V = 2, 8, 32, 16, 50
    H2, H4 = 2 * H, 4 * H

    key = jax.random.PRNGKey(0)
    k_emb, k_wh, k_bh, k_wa, k_wfc, k_bfc, k_q1, k_q2 = jax.random.split(key, 8)

    params = {
        "embedding": jax.random.normal(k_emb, (V, E), jnp.float32) * 0.1,
        "w_h":       jax.random.normal(k_wh, (E, H2), jnp.float32) * 0.1,
        "b_h":       jax.random.normal(k_bh, (1, H2), jnp.float32) * 0.01,
        "w_a":       jax.random.normal(k_wa, (1, H2), jnp.float32) * 0.1,
        "w_fc":      jax.random.normal(k_wfc, (H4, 2), jnp.float32) * 0.1,
        "b_fc":      jax.random.normal(k_bfc, (1, 2), jnp.float32) * 0.01,
    }

    q1_batch = jax.random.randint(k_q1, (B, L), 0, V, dtype=jnp.int32)
    q2_batch = jax.random.randint(k_q2, (B, L), 0, V, dtype=jnp.int32)

    # f32 params: tight-ish tolerance (approx EUP reciprocal in-kernel softmax).
    for mode in ("mlp", "cos"):
        out = jax.block_until_ready(
            text_matcher_forward(q1_batch, q2_batch, params, mode))
        ref = reference_forward(q1_batch, q2_batch, params, mode)
        assert out.shape == (B, 2)
        assert jnp.allclose(out, ref, atol=1e-3, rtol=1e-3), (mode, out, ref)

    # bf16 embedding / projection weights: the precomputed (V, 2H) table is kept
    # in bf16, halving gathered HBM traffic; pooling still accumulates in f32.
    params_bf16 = dict(params,
                       embedding=params["embedding"].astype(jnp.bfloat16),
                       w_h=params["w_h"].astype(jnp.bfloat16))
    for mode in ("mlp", "cos"):
        out = jax.block_until_ready(
            text_matcher_forward(q1_batch, q2_batch, params_bf16, mode))
        ref = reference_forward(q1_batch, q2_batch, params_bf16, mode)
        assert out.shape == (B, 2)
        assert jnp.allclose(out, ref, atol=3e-2, rtol=3e-2), (mode, out, ref)

    print("KERNEL_OK")
</pallas_src>

<mosaic_0001>
module attributes {stable_mosaic.version = 11 : i64} {
  func.func @_matcher_kernel(%arg0: i32, %arg1: memref<2x8x8x32xf32, #tpu.memory_space<vmem>>, %arg2: memref<2x8x8x1xf32, #tpu.memory_space<vmem>>, %arg3: memref<64x8xf32, #tpu.memory_space<vmem>>, %arg4: memref<1x8xf32, #tpu.memory_space<vmem>>, %arg5: memref<8x8xf32, #tpu.memory_space<vmem>>) attributes {dimension_semantics = [#tpu.dimension_semantics<parallel>], iteration_bounds = array<i64: 2>, scalar_prefetch = 0 : i64, scratch_operands = 0 : i64, tpu.core_type = #tpu.core_type<tc>, window_params = [{transform_indices = @transform_0, window_bounds = array<i64: 2, 8, 8, 32>}, {transform_indices = @transform_1, window_bounds = array<i64: 2, 8, 8, 1>}, {pipeline_mode = #tpu.pipeline_mode<synchronous>, transform_indices = @transform_2, window_bounds = array<i64: 64, 8>}, {pipeline_mode = #tpu.pipeline_mode<synchronous>, transform_indices = @transform_3, window_bounds = array<i64: 1, 8>}, {transform_indices = @transform_4, window_bounds = array<i64: 8, 8>}]} {
    %c0 = arith.constant 0 : index
    %c0_0 = arith.constant 0 : index
    %c0_1 = arith.constant 0 : index
    %c0_2 = arith.constant 0 : index
    %0 = vector.load %arg2[%c0, %c0_0, %c0_1, %c0_2] : memref<2x8x8x1xf32, #tpu.memory_space<vmem>>, vector<2x8x8x1xf32>
    %cst = arith.constant dense<0xFF800000> : vector<2x8x1xf32>
    %1 = vector.multi_reduction <maximumf>, %0, %cst [2] : vector<2x8x8x1xf32> to vector<2x8x1xf32>
    %2 = vector.shape_cast %1 : vector<2x8x1xf32> to vector<2x8x1x1xf32>
    %3 = vector.broadcast %2 : vector<2x8x1x1xf32> to vector<2x8x8x1xf32>
    %4 = arith.subf %0, %3 : vector<2x8x8x1xf32>
    %5 = math.exp %4 : vector<2x8x8x1xf32>
    %cst_3 = arith.constant dense<0.000000e+00> : vector<2x8x1xf32>
    %6 = vector.multi_reduction <add>, %5, %cst_3 [2] : vector<2x8x8x1xf32> to vector<2x8x1xf32>
    %7 = vector.shape_cast %6 : vector<2x8x1xf32> to vector<2x8x1x1xf32>
    %8 = tpu.reciprocal %7 {approx = true} : vector<2x8x1x1xf32> -> vector<2x8x1x1xf32>
    %9 = vector.broadcast %8 : vector<2x8x1x1xf32> to vector<2x8x8x1xf32>
    %10 = arith.mulf %5, %9 : vector<2x8x8x1xf32>
    %c0_4 = arith.constant 0 : index
    %c0_5 = arith.constant 0 : index
    %c0_6 = arith.constant 0 : index
    %c0_7 = arith.constant 0 : index
    %11 = vector.load %arg1[%c0_4, %c0_5, %c0_6, %c0_7] : memref<2x8x8x32xf32, #tpu.memory_space<vmem>>, vector<2x8x8x32xf32>
    %12 = vector.broadcast %10 : vector<2x8x8x1xf32> to vector<2x8x8x32xf32>
    %13 = arith.mulf %12, %11 : vector<2x8x8x32xf32>
    %cst_8 = arith.constant dense<0.000000e+00> : vector<2x8x32xf32>
    %14 = vector.multi_reduction <add>, %13, %cst_8 [2] : vector<2x8x8x32xf32> to vector<2x8x32xf32>
    %15 = vector.extract_strided_slice %14 {offsets = [0, 0, 0], sizes = [1, 8, 32], strides = [1, 1, 1]} : vector<2x8x32xf32> to vector<1x8x32xf32>
    %16 = vector.shape_cast %15 : vector<1x8x32xf32> to vector<8x32xf32>
    %17 = vector.extract_strided_slice %14 {offsets = [1, 0, 0], sizes = [1, 8, 32], strides = [1, 1, 1]} : vector<2x8x32xf32> to vector<1x8x32xf32>
    %18 = vector.shape_cast %17 : vector<1x8x32xf32> to vector<8x32xf32>
    %c0_9 = arith.constant 0 : index
    %c0_10 = arith.constant 0 : index
    %19 = vector.load %arg3[%c0_9, %c0_10] : memref<64x8xf32, #tpu.memory_space<vmem>>, vector<32x8xf32>
    %cst_11 = arith.constant dense<0.000000e+00> : vector<8x8xf32>
    %20 = tpu.matmul %16, %19, %cst_11 {dimension_numbers = #tpu.dot_dimension_numbers<[1], [0], [0], [1], [0, 0, 1, 1], [], []>} : vector<8x32xf32>, vector<32x8xf32>, vector<8x8xf32> -> vector<8x8xf32>
    %c32 = arith.constant 32 : index
    %c0_12 = arith.constant 0 : index
    %21 = vector.load %arg3[%c32, %c0_12] : memref<64x8xf32, #tpu.memory_space<vmem>>, vector<32x8xf32>
    %cst_13 = arith.constant dense<0.000000e+00> : vector<8x8xf32>
    %22 = tpu.matmul %18, %21, %cst_13 {dimension_numbers = #tpu.dot_dimension_numbers<[1], [0], [0], [1], [0, 0, 1, 1], [], []>} : vector<8x32xf32>, vector<32x8xf32>, vector<8x8xf32> -> vector<8x8xf32>
    %23 = arith.addf %20, %22 : vector<8x8xf32>
    %c0_14 = arith.constant 0 : index
    %c0_15 = arith.constant 0 : index
    %24 = vector.load %arg4[%c0_14, %c0_15] : memref<1x8xf32, #tpu.memory_space<vmem>>, vector<1x8xf32>
    %25 = vector.broadcast %24 : vector<1x8xf32> to vector<8x8xf32>
    %26 = arith.addf %23, %25 : vector<8x8xf32>
    %c0_16 = arith.constant 0 : index
    %c0_17 = arith.constant 0 : index
    %27 = vector.load %arg5[%c0_16, %c0_17] : memref<8x8xf32, #tpu.memory_space<vmem>>, vector<8x8xf32>
    tpu.vector_store %arg5[%c0_16, %c0_17], %26 {strides = array<i32>} : memref<8x8xf32, #tpu.memory_space<vmem>>, vector<8x8xf32>,
    return
  }
  func.func @transform_0(%arg0: i32) -> (i32, i32, i32, i32) {
    %c0_i32 = arith.constant 0 : i32
    %c0_i32_0 = arith.constant 0 : i32
    %c0_i32_1 = arith.constant 0 : i32
    %c0_i32_2 = arith.constant 0 : i32
    return %c0_i32, %arg0, %c0_i32_0, %c0_i32_1 : i32, i32, i32, i32
  }
  func.func @transform_1(%arg0: i32) -> (i32, i32, i32, i32) {
    %c0_i32 = arith.constant 0 : i32
    %c0_i32_0 = arith.constant 0 : i32
    %c0_i32_1 = arith.constant 0 : i32
    %c0_i32_2 = arith.constant 0 : i32
    return %c0_i32, %arg0, %c0_i32_0, %c0_i32_1 : i32, i32, i32, i32
  }
  func.func @transform_2(%arg0: i32) -> (i32, i32) {
    %c0_i32 = arith.constant 0 : i32
    %c0_i32_0 = arith.constant 0 : i32
    %c0_i32_1 = arith.constant 0 : i32
    return %c0_i32, %c0_i32_0 : i32, i32
  }
  func.func @transform_3(%arg0: i32) -> (i32, i32) {
    %c0_i32 = arith.constant 0 : i32
    %c0_i32_0 = arith.constant 0 : i32
    %c0_i32_1 = arith.constant 0 : i32
    return %c0_i32, %c0_i32_0 : i32, i32
  }
  func.func @transform_4(%arg0: i32) -> (i32, i32) {
    %c0_i32 = arith.constant 0 : i32
    %c0_i32_0 = arith.constant 0 : i32
    return %arg0, %c0_i32 : i32, i32
  }
}

</mosaic_0001>

<bundles_post_ra>
// kernel: tpu_custom_call.1
= control target key start
LH: loop header
LB: loop body
LE: loop exit
PB: predicated region body
PF: predicated region fallthrough
CT: control target
= control target key end

     0   :  { %s1292_s15 = smov 0   ;;  %s1294_s16 = smov 0   ;;  %s1669_s0 = inlined_call_operand.vmem [shape: f32[2,16,8,32], index: 0, kind: input, shape index: {}]   ;;  %s1670_s1 = inlined_call_operand.vmem [shape: f32[2,16,8,1], index: 1, kind: input, shape index: {}]   ;;  %s1671_s2 = inlined_call_operand.vmem [shape: f32[64,8], index: 2, kind: input, shape index: {}]   ;;  %s1672_s3 = inlined_call_operand.vmem [shape: f32[1,8], index: 3, kind: input, shape index: {}]   ;;  %s1673_s4 = inlined_call_operand.vmem [shape: f32[16,8], index: 4, kind: output, shape index: {}]  }
   0x1   :  { %s1296_s17 = smov 0  }
   0x2 LB: > { %s1129_s18 = sadd.s32 4294967295, %s1264_s17   ;;  %s1309_s19 = sadd.s32 1, %s1264_s17   ;;  %s1264_s17 = sphi %s1296_s17, %s1677_s17   ;;  %s1260_s16 = sphi %s1294_s16, %s1676_s16   ;;  %s1256_s15 = sphi %s1292_s15, %s1675_s15  }
   0x3   : > { %s18_s20 = ssub.s32 %s1264_s17, %s1309_s19  ;;  %s21_s21 = sadd.s32 1, %s1260_s16 }
   0x4   : > { %p19_p0 = scmp.eq.s32.totalorder %s18_s20, 0  ;;  %p28_p1 = scmp.ne.s32.totalorder %s1260_s16, %s1256_s15 }
   0x5   : > { %p29_p2 = scmp.eq.s32.totalorder %s1264_s17, 0  ;;  %p1132_p4 = scmp.ge.s32.totalorder %s1264_s17, 2 }
   0x6   : > { %s1318_s22 = scalar_select %p19_p0, %s1260_s16, %s21_s21  }
   0x7   : > { %p1320_p3 = por %p29_p2, %p28_p1  ;;  %154 = sbr.rel (%p1132_p4) target bundleno = 52 (0x34), region = 24 }
   0xc   : > { %157 = sbr.rel (!%p1320_p3) target bundleno = 32 (0x20), region = 28  ;;  %s159_s24 = sand.u32 (%p1320_p3), 1, %s1260_s16  }
   0xd   : > { %s1147_s25 = sshll.u32 (%p1320_p3), %s1264_s17, 6  ;;  %s1133_s26 = sshll.u32 (%p1320_p3), %s159_s24, 7 }
   0xe   : > { %s1332_s29 = scalar_lea.vmem (%p1320_p3), %s1669_s0, %s1147_s25  ;;  %s161_s30 = scalar_lea.vmem (%p1320_p3), [#allocation2], %s1133_s26 }
   0xf   : > { %v223_v0 = vld [vmem:[%s1332_s29] sm:$0xff] (%p1320_p3)  ;;  %v225_v1 = vld [vmem:[%s1332_s29 + $0x8] sm:$0xff] (%p1320_p3)  ;;  %v227_v2 = vld [vmem:[%s1332_s29 + $0x10] sm:$0xff] (%p1320_p3) }
  0x10   : > { %224 = vst [vmem:[%s161_s30] sm:$0xff] (%p1320_p3), %v223_v0  ;;  %v229_v3 = vld [vmem:[%s1332_s29 + $0x18] sm:$0xff] (%p1320_p3)  ;;  %v231_v4 = vld [vmem:[%s1332_s29 + $0x20] sm:$0xff] (%p1320_p3)  ;;  %v233_v5 = vld [vmem:[%s1332_s29 + $0x28] sm:$0xff] (%p1320_p3) }
  0x11   : > { %226 = vst [vmem:[%s161_s30 + $0x8] sm:$0xff] %v225_v1  ;;  %v235_v6 = vld [vmem:[%s1332_s29 + $0x30] sm:$0xff]  ;;  %v237_v7 = vld [vmem:[%s1332_s29 + $0x38] sm:$0xff]  ;;  %v239_v8 = vld [vmem:[%s1332_s29 + $0x80] sm:$0xff] }
  0x12   : > { %228 = vst [vmem:[%s161_s30 + $0x10] sm:$0xff] %v227_v2  ;;  %v241_v9 = vld [vmem:[%s1332_s29 + $0x88] sm:$0xff]  ;;  %v243_v10 = vld [vmem:[%s1332_s29 + $0x90] sm:$0xff]  ;;  %v245_v11 = vld [vmem:[%s1332_s29 + $0x98] sm:$0xff] }
  0x13   : > { %230 = vst [vmem:[%s161_s30 + $0x18] sm:$0xff] %v229_v3  ;;  %v247_v12 = vld [vmem:[%s1332_s29 + $0xa0] sm:$0xff]  ;;  %v249_v13 = vld [vmem:[%s1332_s29 + $0xa8] sm:$0xff]  ;;  %v251_v14 = vld [vmem:[%s1332_s29 + $0xb0] sm:$0xff] }
  0x14   : > { %232 = vst [vmem:[%s161_s30 + $0x20] sm:$0xff] %v231_v4  ;;  %v253_v15 = vld [vmem:[%s1332_s29 + $0xb8] sm:$0xff] }
  0x15   : > { %234 = vst [vmem:[%s161_s30 + $0x28] sm:$0xff] %v233_v5 }
  0x16   : > { %236 = vst [vmem:[%s161_s30 + $0x30] sm:$0xff] %v235_v6 }
  0x17   : > { %238 = vst [vmem:[%s161_s30 + $0x38] sm:$0xff] %v237_v7 }
  0x18   : > { %240 = vst [vmem:[%s161_s30 + $0x40] sm:$0xff] %v239_v8 }
  0x19   : > { %242 = vst [vmem:[%s161_s30 + $0x48] sm:$0xff] %v241_v9 }
  0x1a   : > { %244 = vst [vmem:[%s161_s30 + $0x50] sm:$0xff] %v243_v10 }
  0x1b   : > { %246 = vst [vmem:[%s161_s30 + $0x58] sm:$0xff] %v245_v11 }
  0x1c   : > { %248 = vst [vmem:[%s161_s30 + $0x60] sm:$0xff] %v247_v12 }
  0x1d   : > { %250 = vst [vmem:[%s161_s30 + $0x68] sm:$0xff] %v249_v13 }
  0x1e   : > { %252 = vst [vmem:[%s161_s30 + $0x70] sm:$0xff] %v251_v14 }
  0x1f   : > { %254 = vst [vmem:[%s161_s30 + $0x78] sm:$0xff] %v253_v15 }
  0x20 PF: > { %260 = sbr.rel (!%p1320_p3) target bundleno = 52 (0x34), region = 66  ;;  %s262_s5 = sand.u32 (%p1320_p3), 1, %s1260_s16  }
  0x21   : > { %s1148_s6 = sshll.u32 (%p1320_p3), %s1264_s17, 6  ;;  %s1136_s7 = sshll.u32 (%p1320_p3), %s262_s5, 7 }
  0x22   : > { %s1357_s10 = scalar_lea.vmem (%p1320_p3), %s1670_s1, %s1148_s6  ;;  %s264_s11 = scalar_lea.vmem (%p1320_p3), [#allocation3], %s1136_s7 }
  0x23   : > { %v326_v16 = vld [vmem:[%s1357_s10] sm:$0xff] (%p1320_p3)  ;;  %v328_v17 = vld [vmem:[%s1357_s10 + $0x8] sm:$0xff] (%p1320_p3)  ;;  %v330_v18 = vld [vmem:[%s1357_s10 + $0x10] sm:$0xff] (%p1320_p3) }
  0x24   : > { %327 = vst [vmem:[%s264_s11] sm:$0xff] (%p1320_p3), %v326_v16  ;;  %v332_v19 = vld [vmem:[%s1357_s10 + $0x18] sm:$0xff] (%p1320_p3)  ;;  %v334_v20 = vld [vmem:[%s1357_s10 + $0x20] sm:$0xff] (%p1320_p3)  ;;  %v336_v21 = vld [vmem:[%s1357_s10 + $0x28] sm:$0xff] (%p1320_p3) }
  0x25   : > { %329 = vst [vmem:[%s264_s11 + $0x8] sm:$0xff] %v328_v17  ;;  %v338_v22 = vld [vmem:[%s1357_s10 + $0x30] sm:$0xff]  ;;  %v340_v23 = vld [vmem:[%s1357_s10 + $0x38] sm:$0xff]  ;;  %v342_v24 = vld [vmem:[%s1357_s10 + $0x80] sm:$0xff] }
  0x26   : > { %331 = vst [vmem:[%s264_s11 + $0x10] sm:$0xff] %v330_v18  ;;  %v344_v25 = vld [vmem:[%s1357_s10 + $0x88] sm:$0xff]  ;;  %v346_v26 = vld [vmem:[%s1357_s10 + $0x90] sm:$0xff]  ;;  %v348_v27 = vld [vmem:[%s1357_s10 + $0x98] sm:$0xff] }
  0x27   : > { %333 = vst [vmem:[%s264_s11 + $0x18] sm:$0xff] %v332_v19  ;;  %v350_v28 = vld [vmem:[%s1357_s10 + $0xa0] sm:$0xff]  ;;  %v352_v29 = vld [vmem:[%s1357_s10 + $0xa8] sm:$0xff]  ;;  %v354_v30 = vld [vmem:[%s1357_s10 + $0xb0] sm:$0xff] }
  0x28   : > { %335 = vst [vmem:[%s264_s11 + $0x20] sm:$0xff] %v334_v20  ;;  %v356_v31 = vld [vmem:[%s1357_s10 + $0xb8] sm:$0xff] }
  0x29   : > { %337 = vst [vmem:[%s264_s11 + $0x28] sm:$0xff] %v336_v21 }
  0x2a   : > { %339 = vst [vmem:[%s264_s11 + $0x30] sm:$0xff] %v338_v22 }
  0x2b   : > { %341 = vst [vmem:[%s264_s11 + $0x38] sm:$0xff] %v340_v23 }
  0x2c   : > { %343 = vst [vmem:[%s264_s11 + $0x40] sm:$0xff] %v342_v24 }
  0x2d   : > { %345 = vst [vmem:[%s264_s11 + $0x48] sm:$0xff] %v344_v25 }
  0x2e   : > { %347 = vst [vmem:[%s264_s11 + $0x50] sm:$0xff] %v346_v26 }
  0x2f   : > { %349 = vst [vmem:[%s264_s11 + $0x58] sm:$0xff] %v348_v27 }
  0x30   : > { %351 = vst [vmem:[%s264_s11 + $0x60] sm:$0xff] %v350_v28 }
  0x31   : > { %353 = vst [vmem:[%s264_s11 + $0x68] sm:$0xff] %v352_v29 }
  0x32   : > { %355 = vst [vmem:[%s264_s11 + $0x70] sm:$0xff] %v354_v30 }
  0x33   : > { %357 = vst [vmem:[%s264_s11 + $0x78] sm:$0xff] %v356_v31 }
  0x34 PF: > { %p1139_p5 = scmp.ge.s32.totalorder %s1264_s17, 1  ;;  %p362_p6 = scmp.lt.s32.totalorder %s1264_s17, 3 }
  0x36   : > { %p363_p7 = pnand %p1139_p5, %p362_p6 }
  0x37   : > { %s369_s12 = sand.u32 (!%p363_p7), 1, %s1256_s15   ;;  %p406_p8 = scmp.lt.s32.totalorder (!%p363_p7), %s1129_s18, 1 }
  0x38   : > { %366 = sbr.rel (%p363_p7) target bundleno = 427 (0x1ab), region = 104  ;;  %s1378_s13 = sshll.u32 (!%p363_p7), %s369_s12, 7 }
  0x39   : > { %s1381_s14 = scalar_lea.vmem (!%p363_p7), [#allocation3], %s1378_s13  ;;  %s1572_s15 = scalar_lea.vmem (!%p363_p7), [#allocation2], %s1378_s13 }
  0x3d   : > { %v1266_v32 = vmov 0   ;;  %vm426_vm0 = vcmask 7168   ;;  %v1384_v33 = vld [vmem:[%s1381_s14 + $0x40] sm:$0xff]  ;;  %v1387_v34 = vld [vmem:[%s1381_s14 + $0x10] sm:$0xff]  ;;  %v1399_v39 = vld [vmem:[%s1381_s14 + $0x48] sm:$0xff]  ;;  %vm843_vm1 = vcmask 261120  }
  0x3e   : > { %1176 = vset.pattern.permute.xlu2 %v1266_v32  ;;  %1175 = vset.pattern.permute.xlu1 %v1266_v32  ;;  %v1390_v35 = vld [vmem:[%s1381_s14] sm:$0xff]  ;;  %v483_v36 = vsel %vm426_vm0, %v1384_v33, -inf  ;;  %v441_v37 = vsel %vm426_vm0, %v1387_v34, -inf  ;;  %v1402_v40 = vld [vmem:[%s1381_s14 + $0x50] sm:$0xff]  ;;  %v1405_v41 = vld [vmem:[%s1381_s14 + $0x8] sm:$0xff]  ;;  %v490_v45 = vsel %vm426_vm0, %v1399_v39, -inf }
  0x3f   : > { %1174 = vset.pattern.permute.xlu0 %v1266_v32  ;;  %v427_v38 = vsel %vm426_vm0, %v1390_v35, -inf  ;;  %v484_v42 = vrot.slane %v483_v36, 4  ;;  %v442_v43 = vrot.slane %v441_v37, 4  ;;  %v1410_v46 = vld [vmem:[%s1381_s14 + $0x58] sm:$0xff]  ;;  %v1413_v47 = vld [vmem:[%s1381_s14 + $0x20] sm:$0xff]  ;;  %v491_v48 = vrot.slane %v490_v45, 4 }
  0x40   : > { %v428_v44 = vrot.slane %v427_v38, 4  ;;  %v497_v49 = vsel %vm426_vm0, %v1402_v40, -inf  ;;  %v434_v50 = vsel %vm426_vm0, %v1405_v41, -inf  ;;  %v504_v51 = vsel %vm426_vm0, %v1410_v46, -inf  ;;  %s1679_s18 = smov (!%p406_p8, %s1129_s18), 1 }
  0x41   : > { %v485_v52 = vmax.f32 %v483_v36, %v484_v42  ;;  %v443_v53 = vmax.f32 %v441_v37, %v442_v43  ;;  %v498_v55 = vrot.slane %v497_v49, 4  ;;  %v492_v56 = vmax.f32 %v490_v45, %v491_v48  ;;  %v1428_v42 = vld [vmem:[%s1381_s14 + $0x18] sm:$0xff]  ;;  %v1431_v43 = vld [vmem:[%s1381_s14 + $0x28] sm:$0xff]  ;;  %s1142_s11 = sshll.u32 %s1679_s18, 3 }
  0x42   : > { %v429_v54 = vmax.f32 %v427_v38, %v428_v44  ;;  %v435_v57 = vrot.slane %v434_v50, 4  ;;  %v505_v58 = vrot.slane %v504_v51, 4  ;;  %v455_v59 = vsel %vm426_vm0, %v1413_v47, -inf  ;;  %s409_s20 = scalar_lea.vmem %s1673_s4, %s1142_s11 }
  0x43   : > { %v486_v60 = vrot.slane %v485_v52, 2  ;;  %v444_v61 = vrot.slane %v443_v53, 2  ;;  %v499_v63 = vmax.f32 %v497_v49, %v498_v55  ;;  %v493_v0 = vrot.slane %v492_v56, 2 }
  0x44   : > { %v430_v62 = vrot.slane %v429_v54, 2  ;;  %v436_v1 = vmax.f32 %v434_v50, %v435_v57  ;;  %v506_v2 = vmax.f32 %v504_v51, %v505_v58  ;;  %v456_v3 = vrot.slane %v455_v59, 4  ;;  %v1437_v50 = vld [vmem:[%s1381_s14 + $0x68] sm:$0xff]  ;;  %v1450_v58 = vld [vmem:[%s1381_s14 + $0x70] sm:$0xff] }
  0x45   : > { %v487_v4 = vmax.f32 %v485_v52, %v486_v60  ;;  %v445_v5 = vmax.f32 %v443_v53, %v444_v61  ;;  %v500_v7 = vrot.slane %v499_v63, 2  ;;  %v494_v8 = vmax.f32 %v492_v56, %v493_v0 }
  0x46   : > { %v431_v6 = vmax.f32 %v429_v54, %v430_v62  ;;  %v437_v9 = vrot.slane %v436_v1, 2  ;;  %v507_v10 = vrot.slane %v506_v2, 2  ;;  %v457_v11 = vmax.f32 %v455_v59, %v456_v3  ;;  %v1444_v54 = vld [vmem:[%s1381_s14 + $0x60] sm:$0xff] }
  0x47   : > { %v488_v12 = vrot.slane %v487_v4, 1  ;;  %v446_v13 = vrot.slane %v445_v5, 1  ;;  %v501_v15 = vmax.f32 %v499_v63, %v500_v7  ;;  %v495_v16 = vrot.slane %v494_v8, 1 }
  0x48   : > { %v432_v14 = vrot.slane %v431_v6, 1  ;;  %v438_v17 = vmax.f32 %v436_v1, %v437_v9  ;;  %v508_v18 = vmax.f32 %v506_v2, %v507_v10  ;;  %v458_v19 = vrot.slane %v457_v11, 2 }
  0x49   : > { %v489_v20 = vmax.f32 %v487_v4, %v488_v12  ;;  %v447_v21 = vmax.f32 %v445_v5, %v446_v13  ;;  %v502_v23 = vrot.slane %v501_v15, 1  ;;  %v496_v24 = vmax.f32 %v494_v8, %v495_v16 }
  0x4a   : > { %v433_v22 = vmax.f32 %v431_v6, %v432_v14  ;;  %v439_v25 = vrot.slane %v438_v17, 1  ;;  %v509_v26 = vrot.slane %v508_v18, 1  ;;  %v459_v27 = vmax.f32 %v457_v11, %v458_v19 }
  0x4b   : > { %v547_v28 = vsub.f32 %v1384_v33, %v489_v20  ;;  %v541_v29 = vsub.f32 %v1387_v34, %v447_v21  ;;  %v503_v31 = vmax.f32 %v501_v15, %v502_v23  ;;  %v548_v32 = vsub.f32 %v1399_v39, %v496_v24 }
  0x4c   : > { %v539_v30 = vsub.f32 %v1390_v35, %v433_v22  ;;  %v440_v36 = vmax.f32 %v438_v17, %v439_v25  ;;  %v510_v37 = vmax.f32 %v508_v18, %v509_v26  ;;  %v460_v38 = vrot.slane %v459_v27, 1 }
  0x4d   : > { %v571_v44 = vmul.f32 1.442695, %v547_v28  ;;  %v559_v45 = vmul.f32 1.442695, %v541_v29  ;;  %v549_v33 = vsub.f32 %v1402_v40, %v503_v31  ;;  %v573_v34 = vmul.f32 1.442695, %v548_v32 }
  0x4e   : > { %v555_v48 = vmul.f32 1.442695, %v539_v30  ;;  %v540_v35 = vsub.f32 %v1405_v41, %v440_v36  ;;  %v550_v49 = vsub.f32 %v1410_v46, %v510_v37  ;;  %v461_v39 = vmax.f32 %v459_v27, %v460_v38 }
  0x4f   : > { %1178 = vpow2.f32 %v571_v44  ;;  %v575_v51 = vmul.f32 1.442695, %v549_v33  ;;  %v448_v52 = vsel %vm426_vm0, %v1428_v42, -inf  ;;  %v462_v53 = vsel %vm426_vm0, %v1431_v43, -inf }
  0x50   : > { %1180 = vpow2.f32 %v559_v45  ;;  %v557_v40 = vmul.f32 1.442695, %v540_v35  ;;  %v577_v55 = vmul.f32 1.442695, %v550_v49  ;;  %v543_v41 = vsub.f32 %v1413_v47, %v461_v39 }
  0x51   : > { %1182 = vpow2.f32 %v555_v48  ;;  %v449_v46 = vrot.slane %v448_v52, 4  ;;  %v463_v56 = vrot.slane %v462_v53, 4  ;;  %v518_v57 = vsel %vm426_vm0, %v1437_v50, -inf }
  0x52   : > { %1184 = vpow2.f32 %v573_v34  ;;  %v563_v59 = vmul.f32 1.442695, %v543_v41  ;;  %v519_v60 = vrot.slane %v518_v57, 4  ;;  %v511_v61 = vsel %vm426_vm0, %v1444_v54, -inf }
  0x53   : > { %1186 = vpow2.f32 %v575_v51  ;;  %v450_v62 = vmax.f32 %v448_v52, %v449_v46  ;;  %v464_v63 = vmax.f32 %v462_v53, %v463_v56  ;;  %v512_v0 = vrot.slane %v511_v61, 4 }
  0x54   : > { %1188 = vpow2.f32 %v557_v40  ;;  %v520_v47 = vmax.f32 %v518_v57, %v519_v60  ;;  %v1456_v1 = vsel %vm426_vm0, %v1450_v58, -inf  ;;  %vm972_vm2 = vcmask 1041409  }
  0x55   : > { %v1458_v2 = vpop.eup %1178  ;;  %1190 = vpow2.f32 %v577_v55  ;;  %v451_v3 = vrot.slane %v450_v62, 2  ;;  %v465_v4 = vrot.slane %v464_v63, 2  ;;  %v1460_v5 = vmax.f32 %v511_v61, %v512_v0 }
  0x56   : > { %v1462_v6 = vpop.eup %1180  ;;  %v643_v7 = vsel %vm426_vm0, %v1458_v2, 0.0  ;;  %1192 = vpow2.f32 %v563_v59  ;;  %v521_v8 = vrot.slane %v520_v47, 2  ;;  %v526_v9 = vrot.slane %v1456_v1, 4 }
  0x57   : > { %v1467_v10 = vpop.eup %1182  ;;  %v644_v11 = vrot.slane %v643_v7, 4  ;;  %v601_v12 = vsel %vm426_vm0, %v1462_v6, 0.0  ;;  %v1471_v13 = vmax.f32 %v450_v62, %v451_v3  ;;  %v1473_v14 = vmax.f32 %v464_v63, %v465_v4 }
  0x58   : > { %v1475_v15 = vpop.eup %1184  ;;  %v602_v16 = vrot.slane %v601_v12, 4  ;;  %v587_v17 = vsel %vm426_vm0, %v1467_v10, 0.0  ;;  %v1479_v18 = vmax.f32 %v520_v47, %v521_v8  ;;  %v514_v19 = vrot.slane %v1460_v5, 2 }
  0x59   : > { %v1482_v20 = vpop.eup %1186  ;;  %v645_v21 = vadd.f32 %v644_v11, %v643_v7  ;;  %v588_v22 = vrot.slane %v587_v17, 4  ;;  %v650_v23 = vsel %vm426_vm0, %v1475_v15, 0.0  ;;  %v453_v24 = vrot.slane %v1471_v13, 1 }
  0x5a   : > { %v1487_v25 = vpop.eup %1188  ;;  %v603_v26 = vadd.f32 %v602_v16, %v601_v12  ;;  %v651_v27 = vrot.slane %v650_v23, 4  ;;  %v657_v28 = vsel %vm426_vm0, %v1482_v20, 0.0  ;;  %v467_v29 = vrot.slane %v1473_v14, 1 }
  0x5b   : > { %v1492_v30 = vpop.eup %1190  ;;  %v646_v31 = vrot.slane %v645_v21, 2  ;;  %v589_v32 = vadd.f32 %v588_v22, %v587_v17  ;;  %v658_v36 = vrot.slane %v657_v28, 4  ;;  %v594_v37 = vsel %vm426_vm0, %v1487_v25, 0.0 }
  0x5c   : > { %v1496_v38 = vpop.eup %1192  ;;  %v604_v44 = vrot.slane %v603_v26, 2  ;;  %v652_v45 = vadd.f32 %v651_v27, %v650_v23  ;;  %v595_v48 = vrot.slane %v594_v37, 4  ;;  %v664_v33 = vsel %vm426_vm0, %v1492_v30, 0.0  ;;  %v1503_v23 = vld [vmem:[%s1381_s14 + $0x38] sm:$0xff] }
  0x5d   : > { %v647_v34 = vadd.f32 %v646_v31, %v645_v21  ;;  %v590_v35 = vrot.slane %v589_v32, 2  ;;  %v659_v49 = vadd.f32 %v658_v36, %v657_v28  ;;  %v665_v39 = vrot.slane %v664_v33, 4 }
  0x5e   : > { %v605_v51 = vadd.f32 %v604_v44, %v603_v26  ;;  %v653_v52 = vrot.slane %v652_v45, 2  ;;  %v596_v53 = vadd.f32 %v595_v48, %v594_v37  ;;  %v615_v40 = vsel %vm426_vm0, %v1496_v38, 0.0 }
  0x5f   : > { %v648_v55 = vrot.slane %v647_v34, 1  ;;  %v591_v41 = vadd.f32 %v590_v35, %v589_v32  ;;  %v660_v46 = vrot.slane %v659_v49, 2  ;;  %v666_v56 = vadd.f32 %v665_v39, %v664_v33 }
  0x60   : > { %v606_v57 = vrot.slane %v605_v51, 1  ;;  %v654_v59 = vadd.f32 %v653_v52, %v652_v45  ;;  %v597_v60 = vrot.slane %v596_v53, 2  ;;  %v616_v61 = vrot.slane %v615_v40, 4 }
  0x61   : > { %v649_v62 = vadd.f32 %v648_v55, %v647_v34  ;;  %v592_v63 = vrot.slane %v591_v41, 1  ;;  %v661_v0 = vadd.f32 %v660_v46, %v659_v49  ;;  %v667_v47 = vrot.slane %v666_v56, 2 }
  0x62   : > { %v607_v3 = vadd.f32 %v606_v57, %v605_v51  ;;  %v655_v4 = vrot.slane %v654_v59, 1  ;;  %v598_v7 = vadd.f32 %v597_v60, %v596_v53  ;;  %v617_v8 = vadd.f32 %v616_v61, %v615_v40  ;;  %v1523_v40 = vld [vmem:[%s1381_s14 + $0x30] sm:$0xff] }
  0x63   : > { %1194 = vrcp.f32 %v649_v62  ;;  %v593_v11 = vadd.f32 %v592_v63, %v591_v41  ;;  %v662_v12 = vrot.slane %v661_v0, 1  ;;  %v668_v16 = vadd.f32 %v667_v47, %v666_v56 }
  0x64   : > { %1196 = vrcp.f32 %v607_v3  ;;  %v656_v17 = vadd.f32 %v655_v4, %v654_v59  ;;  %v599_v21 = vrot.slane %v598_v7, 1  ;;  %v618_v22 = vrot.slane %v617_v8, 2 }
  0x65   : > { %1198 = vrcp.f32 %v593_v11  ;;  %v663_v26 = vadd.f32 %v662_v12, %v661_v0  ;;  %v669_v27 = vrot.slane %v668_v16, 1  ;;  %v454_v28 = vmax.f32 %v1471_v13, %v453_v24 }
  0x66   : > { %1200 = vrcp.f32 %v656_v17  ;;  %v600_v31 = vadd.f32 %v599_v21, %v598_v7  ;;  %v619_v32 = vadd.f32 %v618_v22, %v617_v8  ;;  %v468_v36 = vmax.f32 %v1473_v14, %v467_v29 }
  0x67   : > { %1202 = vrcp.f32 %v663_v26  ;;  %v542_v37 = vsub.f32 %v1428_v42, %v454_v28  ;;  %v523_v44 = vrot.slane %v1479_v18, 1  ;;  %v476_v45 = vsel %vm426_vm0, %v1503_v23, -inf }
  0x68   : > { %v670_v48 = vadd.f32 %v669_v27, %v668_v16  ;;  %v620_v33 = vrot.slane %v619_v32, 1  ;;  %v544_v34 = vsub.f32 %v1431_v43, %v468_v36  ;;  %v515_v13 = vmax.f32 %v1460_v5, %v514_v19 }
  0x69   : > { %v1195_v24 = vpop.eup %1194  ;;  %1204 = vrcp.f32 %v600_v31  ;;  %v561_v14 = vmul.f32 1.442695, %v542_v37  ;;  %v524_v29 = vmax.f32 %v1479_v18, %v523_v44  ;;  %v527_v42 = vmax.f32 %v1456_v1, %v526_v9 }
  0x6a   : > { %v1197_v35 = vpop.eup %1196  ;;  %v723_v49 = vmul.f32 %v1195_v24, %v1458_v2  ;;  %v621_v39 = vadd.f32 %v620_v33, %v619_v32  ;;  %v565_v51 = vmul.f32 1.442695, %v544_v34  ;;  %v516_v43 = vrot.slane %v515_v13, 1 }
  0x6b   : > { %v1199_v52 = vpop.eup %1198  ;;  %v717_v53 = vmul.f32 %v1197_v35, %v1462_v6  ;;  %1206 = vpow2.f32 %v561_v14  ;;  %v552_v5 = vsub.f32 %v1437_v50, %v524_v29  ;;  %v528_v19 = vrot.slane %v527_v42, 2  ;;  %v1527_v6 = vld [vmem:[%s1381_s14 + $0x78] sm:$0xff] }
  0x6c   : > { %v1201_v18 = vpop.eup %1200  ;;  %789 = vperm.xlu1 %1175, %v723_v49   ;;  %v715_v1 = vmul.f32 %v1199_v52, %v1467_v10  ;;  %1208 = vrcp.f32 %v670_v48  ;;  %v517_v9 = vmax.f32 %v515_v13, %v516_v43  ;;  %v477_v2 = vrot.slane %v476_v45, 4 }
  0x6d   : > { %v1203_v55 = vpop.eup %1202  ;;  %759 = vperm.xlu2 %1176, %v717_v53   ;;  %1210 = vpow2.f32 %v565_v51  ;;  %v581_v41 = vmul.f32 1.442695, %v552_v5  ;;  %v529_v46 = vmax.f32 %v527_v42, %v528_v19  ;;  %v469_v57 = vsel %vm426_vm0, %v1523_v40, -inf }
  0x6e   : > { %749 = vperm.xlu0 %1174, %v715_v1   ;;  %1212 = vrcp.f32 %v621_v39  ;;  %v551_v50 = vsub.f32 %v1444_v54, %v517_v9  ;;  %v478_v56 = vmax.f32 %v476_v45, %v477_v2  ;;  %v470_v60 = vrot.slane %v469_v57, 4 }
  0x6f   : > { %v1205_v59 = vpop.eup %1204  ;;  %1214 = vpow2.f32 %v581_v41  ;;  %v530_v10 = vrot.slane %v529_v46, 1  ;;  %v724_v61 = vmul.f32 %v1201_v18, %v1475_v15  ;;  %v532_v0 = vsel %vm426_vm0, %v1527_v6, -inf }
  0x70   : > { %v579_v62 = vmul.f32 1.442695, %v551_v50  ;;  %v479_v63 = vrot.slane %v478_v56, 2  ;;  %v725_v3 = vmul.f32 %v1203_v55, %v1482_v20  ;;  %v471_v4 = vmax.f32 %v469_v57, %v470_v60 }
  0x71   : > { %v1535_v47 = vpop.eup %1206  ;;  %v531_v54 = vmax.f32 %v529_v46, %v530_v10  ;;  %v533_v7 = vrot.slane %v532_v0, 4  ;;  %v716_v11 = vmul.f32 %v1205_v59, %v1487_v25  ;;  %vm974_vm3 = vcmask 1042434  }
  0x72   : > { %v1209_v8 = vpop.eup %1208  ;;  %v608_v12 = vsel %vm426_vm0, %v1535_v47, 0.0  ;;  %1216 = vpow2.f32 %v579_v62  ;;  %v480_v15 = vmax.f32 %v478_v56, %v479_v63  ;;  %v472_v22 = vrot.slane %v471_v4, 2 }
  0x73   : > { %v1541_v16 = vpop.eup %1210  ;;  %v609_v17 = vrot.slane %v608_v12, 4  ;;  %v553_v21 = vsub.f32 %v1450_v58, %v531_v54  ;;  %v534_v28 = vmax.f32 %v532_v0, %v533_v7  ;;  %v726_v44 = vmul.f32 %v1209_v8, %v1492_v30 }
  0x74   : > { %v1213_v26 = vpop.eup %1212  ;;  %794 = vperm.xlu1 %1175, %v724_v61   ;;  %v622_v20 = vsel %vm426_vm0, %v1541_v16, 0.0  ;;  %v481_v27 = vrot.slane %v480_v15, 1  ;;  %v473_v37 = vmax.f32 %v471_v4, %v472_v22  ;;  %vm976_vm4 = vcmask 1043459  }
  0x75   : > { %v1546_v31 = vpop.eup %1214  ;;  %799 = vperm.xlu2 %1176, %v725_v3   ;;  %v610_v25 = vadd.f32 %v609_v17, %v608_v12  ;;  %v623_v32 = vrot.slane %v622_v20, 4  ;;  %v583_v36 = vmul.f32 1.442695, %v553_v21  ;;  %v535_v48 = vrot.slane %v534_v28, 2 }
  0x76   : > { %754 = vperm.xlu0 %1174, %v716_v11   ;;  %v678_v58 = vsel %vm426_vm0, %v1546_v31, 0.0  ;;  %v482_v45 = vmax.f32 %v480_v15, %v481_v27  ;;  %v719_v14 = vmul.f32 %v1213_v26, %v1496_v38  ;;  %v474_v42 = vrot.slane %v473_v37, 1 }
  0x77   : > { %v611_v33 = vrot.slane %v610_v25, 2  ;;  %v624_v34 = vadd.f32 %v623_v32, %v622_v20  ;;  %v679_v13 = vrot.slane %v678_v58, 4  ;;  %1218 = vpow2.f32 %v583_v36 }
  0x78   : > { %v1551_v24 = vpop.eup %1216  ;;  %v546_v29 = vsub.f32 %v1503_v23, %v482_v45  ;;  %v536_v35 = vmax.f32 %v534_v28, %v535_v48  ;;  %v475_v53 = vmax.f32 %v473_v37, %v474_v42  ;;  %vm978_vm5 = vcmask 1044484  }
  0x79   : > { %v612_v49 = vadd.f32 %v611_v33, %v610_v25  ;;  %v625_v39 = vrot.slane %v624_v34, 2  ;;  %v680_v30 = vadd.f32 %v679_v13, %v678_v58  ;;  %v671_v51 = vsel %vm426_vm0, %v1551_v24, 0.0 }
  0x7a   : > { %v672_v43 = vrot.slane %v671_v51, 4  ;;  %v569_v52 = vmul.f32 1.442695, %v546_v29  ;;  %v537_v5 = vrot.slane %v536_v35, 1  ;;  %v545_v38 = vsub.f32 %v1523_v40, %v475_v53 }
  0x7b   : > { %v613_v19 = vrot.slane %v612_v49, 1  ;;  %v626_v18 = vadd.f32 %v625_v39, %v624_v34  ;;  %v681_v1 = vrot.slane %v680_v30, 2  ;;  %vm980_vm6 = vcmask 1045509  }
  0x7c   : > { %804 = vperm.xlu1 %1175, %v726_v44   ;;  %v673_v9 = vadd.f32 %v672_v43, %v671_v51  ;;  %1220 = vpow2.f32 %v569_v52  ;;  %v538_v23 = vmax.f32 %v536_v35, %v537_v5  ;;  %v567_v57 = vmul.f32 1.442695, %v545_v38 }
  0x7d   : > { %v1558_v2 = vpop.eup %1218  ;;  %769 = vperm.xlu2 %1176, %v719_v14   ;;  %v614_v55 = vadd.f32 %v613_v19, %v612_v49  ;;  %v627_v41 = vrot.slane %v626_v18, 1  ;;  %v682_v46 = vadd.f32 %v681_v1, %v680_v30  ;;  %vm982_vm7 = vcmask 1046534  }
  0x7e   : > { %v674_v50 = vrot.slane %v673_v9, 2  ;;  %v685_v56 = vsel %vm426_vm0, %v1558_v2, 0.0  ;;  %v554_v59 = vsub.f32 %v1527_v6, %v538_v23  ;;  %vm984_vm8 = vcmask 1047559  }
  0x7f   : > { %1222 = vrcp.f32 %v614_v55  ;;  %v628_v10 = vadd.f32 %v627_v41, %v626_v18  ;;  %v683_v60 = vrot.slane %v682_v46, 1  ;;  %v686_v61 = vrot.slane %v685_v56, 4 }
  0x80   : > { %v675_v62 = vadd.f32 %v674_v50, %v673_v9  ;;  %1224 = vpow2.f32 %v567_v57  ;;  %v585_v40 = vmul.f32 1.442695, %v554_v59  ;;  %v732_v57 = vld [vmem:[%s1572_s15 + $0x8] sm:$0xff]  ;;  %v735_v59 = vld [vmem:[%s1572_s15 + $0x20] sm:$0xff]  ;;  %vm1050_vm9 = vcmask 64512  }
  0x81   : > { %1226 = vrcp.f32 %v628_v10  ;;  %v684_v63 = vadd.f32 %v683_v60, %v682_v46  ;;  %v687_v0 = vadd.f32 %v686_v61, %v685_v56  ;;  %v733_v56 = vld [vmem:[%s1572_s15 + $0x10] sm:$0xff]  ;;  %v731_v61 = vld [vmem:[%s1572_s15] sm:$0xff] }
  0x82   : > { %v1221_v3 = vpop.eup %1220  ;;  %v676_v54 = vrot.slane %v675_v62, 1  ;;  %1228 = vpow2.f32 %v585_v40  ;;  %v741_v40 = vld [vmem:[%s1572_s15 + $0x50] sm:$0xff] }
  0x83   : > { %1230 = vrcp.f32 %v684_v63  ;;  %v688_v4 = vrot.slane %v687_v0, 2  ;;  %v636_v7 = vsel %vm426_vm0, %v1221_v3, 0.0 }
  0x84   : > { %v677_v8 = vadd.f32 %v676_v54, %v675_v62  ;;  %v637_v11 = vrot.slane %v636_v7, 4 }
  0x85   : > { %v1223_v6 = vpop.eup %1222  ;;  %v689_v12 = vadd.f32 %v688_v4, %v687_v0  ;;  %v734_v0 = vld [vmem:[%s1572_s15 + $0x18] sm:$0xff] }
  0x86   : > { %v1225_v15 = vpop.eup %1224  ;;  %v718_v17 = vmul.f32 %v1223_v6, %v1535_v47  ;;  %1232 = vrcp.f32 %v677_v8  ;;  %v638_v21 = vadd.f32 %v637_v11, %v636_v7  ;;  %v959_v4 = vld [vmem:[%s1671_s2 + $0x18] sm:$0xff]  ;;  %v740_v8 = vld [vmem:[%s1572_s15 + $0x48] sm:$0xff] }
  0x87   : > { %v1227_v22 = vpop.eup %1226  ;;  %v690_v26 = vrot.slane %v689_v12, 1  ;;  %v629_v20 = vsel %vm426_vm0, %v1225_v15, 0.0  ;;  %1037 = vmatpush.msra.mxu1 %v959_v4 }
  0x88   : > { %v1229_v27 = vpop.eup %1228  ;;  %764 = vperm.xlu0 %1174, %v718_v17   ;;  %v720_v28 = vmul.f32 %v1227_v22, %v1541_v16  ;;  %v639_v25 = vrot.slane %v638_v21, 2  ;;  %v630_v32 = vrot.slane %v629_v20, 4  ;;  %v736_v17 = vld [vmem:[%s1572_s15 + $0x28] sm:$0xff] }
  0x89   : > { %v1231_v36 = vpop.eup %1230  ;;  %v691_v37 = vadd.f32 %v690_v26, %v689_v12  ;;  %v692_v44 = vsel %vm426_vm0, %v1229_v27, 0.0 }
  0x8a   : > { %774 = vperm.xlu1 %1175, %v720_v28   ;;  %v728_v58 = vmul.f32 %v1231_v36, %v1546_v31  ;;  %v640_v47 = vadd.f32 %v639_v25, %v638_v21  ;;  %v631_v45 = vadd.f32 %v630_v32, %v629_v20  ;;  %v693_v48 = vrot.slane %v692_v44, 4  ;;  %v958_v21 = vld [vmem:[%s1671_s2 + $0x10] sm:$0xff]  ;;  %v957_v36 = vld [vmem:[%s1671_s2 + $0x8] sm:$0xff] }
  0x8b   : > { %1234 = vrcp.f32 %v691_v37  ;;  %1038 = vmatpush.msra.mxu1 %v958_v21  ;;  %v742_v37 = vld [vmem:[%s1572_s15 + $0x58] sm:$0xff] }
  0x8c   : > { %v1233_v33 = vpop.eup %1232  ;;  %814 = vperm.xlu2 %1176, %v728_v58   ;;  %v641_v34 = vrot.slane %v640_v47, 1  ;;  %v632_v13 = vrot.slane %v631_v45, 2  ;;  %v694_v14 = vadd.f32 %v693_v48, %v692_v44  ;;  %v738_v48 = vld [vmem:[%s1572_s15 + $0x38] sm:$0xff] }
  0x8d   : > { %v727_v16 = vmul.f32 %v1233_v33, %v1551_v24  ;;  %1039 = vmatpush.msra.mxu1 %v957_v36 }
  0x8e   : > { %v642_v29 = vadd.f32 %v641_v34, %v640_v47  ;;  %v633_v42 = vadd.f32 %v632_v13, %v631_v45  ;;  %v695_v35 = vrot.slane %v694_v14, 2  ;;  %v956_v34 = vld [vmem:[%s1671_s2] sm:$0xff] }
  0x8f   : > { %1040 = vmatpush.msra.mxu1 %v956_v34 }
  0x90   : > { %809 = vperm.xlu0 %1174, %v727_v16   ;;  %1236 = vrcp.f32 %v642_v29  ;;  %v634_v49 = vrot.slane %v633_v42, 1  ;;  %v696_v39 = vadd.f32 %v695_v35, %v694_v14  ;;  %v743_v16 = vld [vmem:[%s1572_s15 + $0x60] sm:$0xff]  ;;  %v963_v29 = vld [vmem:[%s1671_s2 + $0x38] sm:$0xff] }
  0x91   : > { %v1235_v30 = vpop.eup %1234  ;;  %1000 = vmatpush.msra.mxu0 %v963_v29 }
  0x92   : > { %v729_v31 = vmul.f32 %v1235_v30, %v1558_v2  ;;  %v635_v51 = vadd.f32 %v634_v49, %v633_v42  ;;  %v697_v43 = vrot.slane %v696_v39, 1 }
  0x94   : > { %819 = vperm.xlu1 %1175, %v729_v31   ;;  %1238 = vrcp.f32 %v635_v51  ;;  %v698_v52 = vadd.f32 %v697_v43, %v696_v39 }
  0x96   : > { %v1237_v53 = vpop.eup %1236  ;;  %1240 = vrcp.f32 %v698_v52 }
  0x97   : > { %v722_v5 = vmul.f32 %v1237_v53, %v1221_v3  ;;  %v739_v3 = vld [vmem:[%s1572_s15 + $0x40] sm:$0xff]  ;;  %v962_v53 = vld [vmem:[%s1671_s2 + $0x30] sm:$0xff] }
  0x98   : > { %1001 = vmatpush.msra.mxu0 %v962_v53 }
  0x99   : > { %784 = vperm.xlu2 %1176, %v722_v5  }
  0x9a   : > { %v1239_v24 = vpop.eup %1238 }
  0x9b   : > { %v721_v19 = vmul.f32 %v1239_v24, %v1225_v15 }
  0x9c   : > { %v1241_v18 = vpop.eup %1240 }
  0x9d   : > { %779 = vperm.xlu0 %1174, %v721_v19   ;;  %v730_v1 = vmul.f32 %v1241_v18, %v1229_v27  ;;  %v961_v18 = vld [vmem:[%s1671_s2 + $0x28] sm:$0xff] }
  0x9e   : > { %1002 = vmatpush.msra.mxu0 %v961_v18 }
  0xa5   : > { %824 = vperm.xlu0 %1174, %v730_v1  }
  0xc7   : > { %v760_v9 = vpop.permute.xlu2 %759 }
  0xc8   : > { %v829_v60 = vmul.f32 %v760_v9, %v733_v56 }
  0xca   : > { %v858_v7 = vsel %vm843_vm1, %v829_v60, 0.0 }
  0xcb   : > { %v859_v27 = vrot.slane %v858_v7, 4 }
  0xcd   : > { %v860_v42 = vadd.f32 %v859_v27, %v858_v7 }
  0xcf   : > { %v800_v23 = vpop.permute.xlu2 %799 }
  0xd0   : > { %v837_v12 = vmul.f32 %v800_v23, %v741_v40  ;;  %v960_v23 = vld [vmem:[%s1671_s2 + $0x20] sm:$0xff] }
  0xd1   : > { %1003 = vmatpush.msra.mxu0 %v960_v23 }
  0xd2   : > { %v914_v58 = vsel %vm843_vm1, %v837_v12, 0.0 }
  0xd3   : > { %v915_v30 = vrot.slane %v914_v58, 4 }
  0xd5   : > { %v916_v56 = vadd.f32 %v915_v30, %v914_v58 }
  0xd7   : > { %v770_v41 = vpop.permute.xlu2 %769 }
  0xd8   : > { %v831_v63 = vmul.f32 %v770_v41, %v735_v59 }
  0xda   : > { %v872_v22 = vsel %vm843_vm1, %v831_v63, 0.0 }
  0xdb   : > { %v873_v47 = vrot.slane %v872_v22, 4 }
  0xdd   : > { %v874_v5 = vadd.f32 %v873_v47, %v872_v22 }
  0xde   : > { %v790_v38 = vpop.permute.xlu1 %789 }
  0xdf   : > { %v835_v26 = vmul.f32 %v790_v38, %v739_v3  ;;  %v745_v38 = vld [vmem:[%s1572_s15 + $0x70] sm:$0xff] }
  0xe0   : > { %v750_v2 = vpop.permute.xlu0 %749 }
  0xe1   : > { %v827_v54 = vmul.f32 %v750_v2, %v731_v61  ;;  %v900_v13 = vsel %vm843_vm1, %v835_v26, 0.0  ;;  %v861_v2 = vrot.slane %v860_v42, 2  ;;  %v875_v61 = vrot.slane %v874_v5, 2 }
  0xe2   : > { %v901_v24 = vrot.slane %v900_v13, 4 }
  0xe3   : > { %v844_v28 = vsel %vm843_vm1, %v827_v54, 0.0  ;;  %v862_v7 = vadd.f32 %v861_v2, %v860_v42  ;;  %v876_v21 = vadd.f32 %v875_v61, %v874_v5 }
  0xe4   : > { %v845_v14 = vrot.slane %v844_v28, 4 }
  0xe6   : > { %v795_v55 = vpop.permute.xlu1 %794  ;;  %v1577_v10 = vpop.permute.xlu2 %814  ;;  %v846_v1 = vadd.f32 %v845_v14, %v844_v28 }
  0xe7   : > { %v836_v25 = vmul.f32 %v795_v55, %v740_v8  ;;  %v744_v55 = vld [vmem:[%s1572_s15 + $0x68] sm:$0xff] }
  0xe8   : > { %v755_v46 = vpop.permute.xlu0 %754  ;;  %v847_v3 = vrot.slane %v846_v1, 2 }
  0xe9   : > { %v828_v62 = vmul.f32 %v755_v46, %v732_v57  ;;  %v907_v35 = vsel %vm843_vm1, %v836_v25, 0.0  ;;  %v863_v25 = vrot.slane %v862_v7, 1 }
  0xea   : > { %v908_v9 = vrot.slane %v907_v35, 4  ;;  %v848_v27 = vadd.f32 %v847_v3, %v846_v1 }
  0xeb   : > { %v851_v11 = vsel %vm843_vm1, %v828_v62, 0.0  ;;  %v902_v62 = vadd.f32 %v901_v24, %v900_v13 }
  0xec   : > { %v852_v32 = vrot.slane %v851_v11, 4  ;;  %v909_v54 = vadd.f32 %v908_v9, %v907_v35 }
  0xed   : > { %v903_v22 = vrot.slane %v902_v62, 2 }
  0xee   : > { %v805_v50 = vpop.permute.xlu1 %804  ;;  %v853_v49 = vadd.f32 %v852_v32, %v851_v11  ;;  %v910_v28 = vrot.slane %v909_v54, 2 }
  0xef   : > { %v838_v39 = vmul.f32 %v805_v50, %v742_v37  ;;  %v904_v34 = vadd.f32 %v903_v22, %v902_v62 }
  0xf0   : > { %v854_v41 = vrot.slane %v853_v49, 2  ;;  %v911_v29 = vadd.f32 %v910_v28, %v909_v54 }
  0xf1   : > { %v921_v46 = vsel %vm843_vm1, %v838_v39, 0.0  ;;  %v905_v24 = vrot.slane %v904_v34, 1 }
  0xf2   : > { %v922_v4 = vrot.slane %v921_v46, 4  ;;  %v855_v11 = vadd.f32 %v854_v41, %v853_v49  ;;  %v864_v49 = vadd.f32 %v863_v25, %v862_v7 }
  0xf3   : > { %v785_v45 = vpop.permute.xlu2 %784 }
  0xf4   : > { %v834_v31 = vmul.f32 %v785_v45, %v738_v48  ;;  %v856_v36 = vrot.slane %v855_v11, 1 }
  0xf6   : > { %v893_v57 = vsel %vm843_vm1, %v834_v31, 0.0  ;;  %v857_v30 = vadd.f32 %v856_v36, %v855_v11 }
  0xf7   : > { %v894_v8 = vrot.slane %v893_v57, 4 }
  0xf9   : > { %v895_v32 = vadd.f32 %v894_v8, %v893_v57 }
  0xfa   : > { %v765_v6 = vpop.permute.xlu0 %764 }
  0xfb   : > { %v830_v15 = vmul.f32 %v765_v6, %v734_v0  ;;  %v840_v0 = vmul.f32 %v1577_v10, %v744_v55  ;;  %v923_v10 = vadd.f32 %v922_v4, %v921_v46  ;;  %v896_v39 = vrot.slane %v895_v32, 2  ;;  %v746_v46 = vld [vmem:[%s1572_s15 + $0x78] sm:$0xff] }
  0xfc   : > { %v775_v20 = vpop.permute.xlu1 %774 }
  0xfd   : > { %v832_v44 = vmul.f32 %v775_v20, %v736_v17  ;;  %v865_v33 = vsel %vm843_vm1, %v830_v15, 0.0  ;;  %v917_v17 = vrot.slane %v916_v56, 2  ;;  %v935_v20 = vsel %vm843_vm1, %v840_v0, 0.0 }
  0xfe   : > { %v866_v51 = vrot.slane %v865_v33, 4  ;;  %v936_v13 = vrot.slane %v935_v20, 4  ;;  %v924_v42 = vrot.slane %v923_v10, 2  ;;  %v897_v2 = vadd.f32 %v896_v39, %v895_v32 }
  0xff   : > { %v879_v43 = vsel %vm843_vm1, %v832_v44, 0.0  ;;  %v737_v44 = vld [vmem:[%s1572_s15 + $0x30] sm:$0xff]  ;;  %v918_v48 = vadd.f32 %v917_v17, %v916_v56 }
 0x100   : > { %v880_v50 = vrot.slane %v879_v43, 4  ;;  %v867_v59 = vadd.f32 %v866_v51, %v865_v33  ;;  %v877_v33 = vrot.slane %v876_v21, 1  ;;  %v925_v23 = vadd.f32 %v924_v42, %v923_v10 }
 0x101   : > { %v919_v5 = vrot.slane %v918_v48, 1  ;;  %v898_v54 = vrot.slane %v897_v2, 1 }
 0x102   : > { %v810_v52 = vpop.permute.xlu0 %809  ;;  %v881_v6 = vadd.f32 %v880_v50, %v879_v43  ;;  %v868_v12 = vrot.slane %v867_v59, 2  ;;  %v878_v1 = vadd.f32 %v877_v33, %v876_v21  ;;  %v926_v0 = vrot.slane %v925_v23, 1 }
 0x103   : > { %v839_v19 = vmul.f32 %v810_v52, %v743_v16  ;;  %v849_v16 = vrot.slane %v848_v27, 1 }
 0x104   : > { %v882_v37 = vrot.slane %v881_v6, 2  ;;  %v869_v58 = vadd.f32 %v868_v12, %v867_v59 }
 0x105   : > { %v928_v40 = vsel %vm843_vm1, %v839_v19, 0.0  ;;  %v937_v19 = vadd.f32 %v936_v13, %v935_v20  ;;  %v850_v9 = vadd.f32 %v849_v16, %v848_v27  ;;  %v927_v27 = vadd.f32 %v926_v0, %v925_v23 }
 0x106   : > { %v820_v60 = vpop.permute.xlu1 %819  ;;  %v929_v15 = vrot.slane %v928_v40, 4  ;;  %v883_v31 = vadd.f32 %v882_v37, %v881_v6  ;;  %v870_v51 = vrot.slane %v869_v58, 1  ;;  %v899_v37 = vadd.f32 %v898_v54, %v897_v2 }
 0x107   : > { %v841_v63 = vmul.f32 %v820_v60, %v745_v38  ;;  %v912_v38 = vrot.slane %v911_v29, 1  ;;  %v1016_v50 = vsel %vm972_vm2, %v857_v30, %v850_v9  ;;  %v906_v60 = vadd.f32 %v905_v24, %v904_v34 }
 0x108   : > { %v930_v47 = vadd.f32 %v929_v15, %v928_v40  ;;  %v884_v55 = vrot.slane %v883_v31, 1  ;;  %v871_v56 = vadd.f32 %v870_v51, %v869_v58  ;;  %v938_v61 = vrot.slane %v937_v19, 2 }
 0x109   : > { %v942_v26 = vsel %vm843_vm1, %v841_v63, 0.0  ;;  %v913_v63 = vadd.f32 %v912_v38, %v911_v29  ;;  %v1017_v8 = vsel %vm974_vm3, %v864_v49, %v1016_v50 }
 0x10a   : > { %v943_v45 = vrot.slane %v942_v26, 4  ;;  %v931_v43 = vrot.slane %v930_v47, 2  ;;  %v885_v4 = vadd.f32 %v884_v55, %v883_v31  ;;  %v1018_v15 = vsel %vm976_vm4, %v871_v56, %v1017_v8  ;;  %v1177_v31 = vld [vmem:[%s1672_s3] ss:$0 sm:$0xff] }
 0x10b   : > { %v939_v17 = vadd.f32 %v938_v61, %v937_v19  ;;  %v973_v20 = vsel %vm972_vm2, %v913_v63, %v906_v60  ;;  %v1019_v25 = vsel %vm978_vm5, %v878_v1, %v1018_v15 }
 0x10c   : > { %v944_v52 = vadd.f32 %v943_v45, %v942_v26  ;;  %v932_v57 = vadd.f32 %v931_v43, %v930_v47  ;;  %v920_v26 = vadd.f32 %v919_v5, %v918_v48 }
 0x10d   : > { %v940_v58 = vrot.slane %v939_v17, 1 }
 0x10e   : > { %v945_v59 = vrot.slane %v944_v52, 2  ;;  %v933_v11 = vrot.slane %v932_v57, 1  ;;  %v975_v33 = vsel %vm974_vm3, %v920_v26, %v973_v20 }
 0x10f   : > { %v780_v14 = vpop.permute.xlu0 %779  ;;  %v977_v13 = vsel %vm976_vm4, %v927_v27, %v975_v33  ;;  %v941_v29 = vadd.f32 %v940_v58, %v939_v17 }
 0x110   : > { %v833_v35 = vmul.f32 %v780_v14, %v737_v44  ;;  %v946_v6 = vadd.f32 %v945_v59, %v944_v52  ;;  %v934_v32 = vadd.f32 %v933_v11, %v932_v57  ;;  %v1020_v44 = vsel %vm980_vm6, %v885_v4, %v1019_v25 }
 0x112   : > { %v886_v53 = vsel %vm843_vm1, %v833_v35, 0.0  ;;  %v947_v36 = vrot.slane %v946_v6, 1  ;;  %v979_v16 = vsel %vm978_vm5, %v934_v32, %v977_v13 }
 0x113   : > { %v887_v18 = vrot.slane %v886_v53, 4  ;;  %v981_v49 = vsel %vm980_vm6, %v941_v29, %v979_v16 }
 0x114   : > { %v948_v14 = vadd.f32 %v947_v36, %v946_v6 }
 0x115   : > { %v888_v41 = vadd.f32 %v887_v18, %v886_v53 }
 0x116   : > { %v983_v39 = vsel %vm982_vm7, %v948_v14, %v981_v49 }
 0x117   : > { %v889_v62 = vrot.slane %v888_v41, 2  ;;  %v825_v40 = vpop.permute.xlu0 %824 }
 0x118   : > { %v842_v3 = vmul.f32 %v825_v40, %v746_v46 }
 0x119   : > { %v890_v7 = vadd.f32 %v889_v62, %v888_v41 }
 0x11a   : > { %v949_v12 = vsel %vm843_vm1, %v842_v3, 0.0 }
 0x11b   : > { %v891_v21 = vrot.slane %v890_v7, 1  ;;  %v950_v22 = vrot.slane %v949_v12, 4 }
 0x11d   : > { %v892_v28 = vadd.f32 %v891_v21, %v890_v7  ;;  %v951_v10 = vadd.f32 %v950_v22, %v949_v12 }
 0x11f   : > { %v952_v47 = vrot.slane %v951_v10, 2  ;;  %v1021_v45 = vsel %vm982_vm7, %v892_v28, %v1020_v44 }
 0x120   : > { %v1022_v48 = vsel %vm984_vm8, %v899_v37, %v1021_v45 }
 0x121   : > { %v953_v34 = vadd.f32 %v952_v47, %v951_v10  ;;  %1144 = vmatmul.msk.f32.vlgmr.msra.gmra.mxu1 %vm843_vm1, %v1022_v48 }
 0x123   : > { %v954_v42 = vrot.slane %v953_v34, 1 }
 0x125   : > { %v955_v35 = vadd.f32 %v954_v42, %v953_v34 }
 0x127   : > { %v985_v30 = vsel %vm984_vm8, %v955_v35, %v983_v39 }
 0x128   : > { %1143 = vmatmul.msk.f32.vlgmr.msra.gmra.mxu0 %vm843_vm1, %v985_v30 }
 0x19e   : > { %v1042_v51 = vpop.f32.mrf.mxu1 }
 0x1a5   : > { %v1005_v43 = vpop.f32.mrf.mxu0 }
 0x1a6   : > { %v1043_v52 = vadd.f32 %v1042_v51, %v1005_v43 }
 0x1a8   : > { %v1049_v53 = vadd.f32 %v1177_v31, %v1043_v52 }
 0x1aa   : > { %1051 = vst.msk [vmem:[%s409_s20] sm:$0xff] %vm1050_vm9, %v1049_v53 }
 0x1ab PF: > { %p11_p9 = scmp.ge.s32.totalorder %s1309_s19, 4   ;;  %s1675_s15 = smov %s1260_s16 }
 0x1ac   : > { %s1676_s16 = smov %s1318_s22  ;;  %s1677_s17 = smov %s1309_s19 }
 0x1ad   :  { %13 = sbr.rel (!%p11_p9) target bundleno = 2 (0x2), region = 155 }

</bundles_post_ra>
